<compile_context>
chip_gen: v7x
topology: tpu7x:2x2x1
jax: 0.10.0
libtpu: 0.0.40
codegen_flags: <defaults>
</compile_context>

<pallas_src>
import functools

import jax
import jax.numpy as jnp
import numpy as np
from jax import lax
from jax.experimental import pallas as pl
from jax.experimental.pallas import tpu as pltpu


def _round_up(x, m):
    return ((x + m - 1) // m) * m


def _ls_ce_kernel(tgt_ref, lp_ref, out_ref, *, n_rows, vocab, tm, tv,
                  ignore_index, need_row_mask, need_col_mask):
    i = pl.program_id(0)   # row-tile index (parallel)
    j = pl.program_id(1)   # vocab-chunk index (innermost reduction)

    # Per-row-tile accumulator lives in the VMEM-resident output block.
    @pl.when(j == 0)
    def _init():
        out_ref[...] = jnp.zeros_like(out_ref)

    lp = lp_ref[...]        # (tm, tv), native dtype -- no upcast
    tgt = tgt_ref[...]      # (tm, 1) int32

    # Row validity: OOB rows of the ragged last row tile + ignore_index rows.
    # Invalid targets are pushed to -1 (never matches any lane) and invalid
    # lprob rows are zeroed with a NaN-safe select, so garbage in the
    # out-of-bounds region can never leak into either partial sum.
    # Statically skipped when not needed (divisible N, no ignore_index).
    if need_row_mask or (ignore_index is not None):
        if need_row_mask:
            row_ids = jax.lax.broadcasted_iota(jnp.int32, (tm, 1), 0) + i * tm
            valid = row_ids < n_rows
            if ignore_index is not None:
                valid = jnp.logical_and(valid, tgt != ignore_index)
        else:
            valid = tgt != ignore_index
        tgt = jnp.where(valid, tgt, -1)
        lp = jnp.where(valid, lp, jnp.zeros_like(lp))

    # gather(dim=-1, index=target) via a one-hot compare of the (tm,1)
    # chunk-local target against a (1, tv) lane iota (no (tm, tv) iota
    # materialized -- the compare broadcasts).
    lane_ids = jax.lax.broadcasted_iota(jnp.int32, (1, tv), 1)
    onehot = lane_ids == (tgt - j * tv)                          # (tm, tv)
    sel = jnp.where(onehot, lp, jnp.zeros_like(lp))              # (tm, tv)

    # Column reductions on the MXU (VPU stays free for the selects/compares);
    # accumulate in f32 regardless of the streamed dtype.
    ones_row = jnp.ones((1, tm), dtype=lp.dtype)
    nll_p = jnp.dot(ones_row, sel, precision=lax.Precision.HIGHEST,
                    preferred_element_type=jnp.float32)          # (1, tv)
    sm_p = jnp.dot(ones_row, lp, precision=lax.Precision.HIGHEST,
                   preferred_element_type=jnp.float32)           # (1, tv)

    if need_col_mask:
        # Ragged last vocab chunk: drop out-of-bounds lanes (cheap (1, tv)
        # select; all-true for non-last chunks).  nll needs no column mask:
        # valid targets are < vocab and invalid targets were set to -1.
        col_ok = (lane_ids + j * tv) < vocab
        sm_p = jnp.where(col_ok, sm_p, 0.0)

    out_ref[...] += jnp.concatenate([nll_p, sm_p], axis=0)[None]


def label_smoothed_ce_loss(lprobs, target, *, smoothing, ignore_index=None,
                           tm=None, tv=None, vmem_limit_bytes=None):
    """Forward of LabelSmoothedCrossEntropyCriterion with reduce=True.

    lprobs: (N, V) (or (..., V)) log-probabilities, streamed in native dtype.
    target: integer class indices, any shape broadcastable to (N,) / (N, 1).
    Returns a scalar float32 loss.
    """
    # TODO(synk): reduce=False path (per-row losses) not implemented; reduce=True only.
    if lprobs.ndim > 2:
        lprobs = lprobs.reshape(-1, lprobs.shape[-1])
    target = target.reshape(-1).astype(jnp.int32)[:, None]       # (N, 1)

    n, vocab = lprobs.shape
    itemsize = jnp.dtype(lprobs.dtype).itemsize
    sub = max(8, 32 // itemsize)        # sublane packing: 8 f32, 16 bf16, 32 int8/fp8

    # ---- tile selection: big, lane-dense blocks; lprobs block <= ~8 MiB ----
    if tv is None:
        tv = min(_round_up(vocab, 128), 2048)
    else:
        tv = _round_up(tv, 128)
    if tm is None:
        budget = 8 * 1024 * 1024        # per-buffer lprobs block (v7x-safe)
        tm = max(sub, min(1024, (budget // (tv * itemsize)) // sub * sub))
    tm = _round_up(tm, sub)
    tm = min(tm, _round_up(n, sub))

    num_row_tiles = pl.cdiv(n, tm)
    num_chunks = pl.cdiv(vocab, tv)
    need_row_mask = (n % tm) != 0
    need_col_mask = (vocab % tv) != 0

    if vmem_limit_bytes is None:
        lp_block = tm * tv * itemsize
        tgt_block = tm * 128 * 4        # (tm, 1) int32, lane-padded
        out_block = 8 * tv * 4          # (1, 2, tv) f32, sublane-padded
        vmem_limit_bytes = 2 * (lp_block + tgt_block + out_block) + (8 << 20)
        vmem_limit_bytes = int(min(max(vmem_limit_bytes, 32 << 20), 64 << 20))

    kernel = functools.partial(
        _ls_ce_kernel,
        n_rows=n, vocab=vocab, tm=tm, tv=tv,
        ignore_index=ignore_index,
        need_row_mask=need_row_mask, need_col_mask=need_col_mask)

    parts = pl.pallas_call(
        kernel,
        out_shape=jax.ShapeDtypeStruct((num_row_tiles, 2, tv), jnp.float32),
        grid_spec=pltpu.PrefetchScalarGridSpec(
            num_scalar_prefetch=0,
            grid=(num_row_tiles, num_chunks),
            in_specs=[
                pl.BlockSpec((tm, 1), lambda i, j: (i, 0)),      # targets (reused across j)
                pl.BlockSpec((tm, tv), lambda i, j: (i, j)),     # lprobs, native dtype
            ],
            out_specs=pl.BlockSpec((1, 2, tv), lambda i, j: (i, 0, 0)),
        ),
        compiler_params=pltpu.CompilerParams(
            dimension_semantics=("parallel", "arbitrary"),
            vmem_limit_bytes=vmem_limit_bytes,
        ),
    )(target, lprobs)

    # Tiny final combine in the wrapper (per-row-tile partials -> scalar loss).
    nll_sum = -jnp.sum(parts[:, 0, :])
    smooth_sum = -jnp.sum(parts[:, 1, :])
    eps_i = smoothing / vocab
    return (1.0 - smoothing) * nll_sum + eps_i * smooth_sum


def _reference(lprobs, target, smoothing, ignore_index):
    lprobs = lprobs.astype(jnp.float32)
    if target.ndim == lprobs.ndim - 1:
        target = target[:, None]
    nll = -jnp.take_along_axis(lprobs, target, axis=-1)
    smooth = -jnp.sum(lprobs, axis=-1, keepdims=True)
    if ignore_index is not None:
        pad = target == ignore_index
        nll = jnp.where(pad, 0.0, nll)
        smooth = jnp.where(pad, 0.0, smooth)
    nll = jnp.sum(nll)
    smooth = jnp.sum(smooth)
    eps_i = smoothing / lprobs.shape[-1]
    return (1.0 - smoothing) * nll + eps_i * smooth


def _check(name, got, want, rtol=1e-4, atol=1e-2):
    got = np.asarray(got)
    want = np.asarray(want)
    if not np.allclose(got, want, rtol=rtol, atol=atol):
        raise AssertionError(f"{name} mismatch: pallas={got} ref={want}")


if __name__ == "__main__":
    smoothing = 0.1
    key = jax.random.PRNGKey(0)
    k1, k2, k3, k4, k5, k6 = jax.random.split(key, 6)

    # Case 1: batch=2, seq=8, vocab=128, f32, with ignore_index (pad id = 1).
    batch, seq, vocab = 2, 8, 128
    ignore_index = 1
    logits = jax.random.normal(k1, (batch * seq, vocab), dtype=jnp.float32)
    lprobs = jax.nn.log_softmax(logits, axis=-1)
    target = jax.random.randint(k2, (batch * seq,), 0, vocab, dtype=jnp.int32)
    target = target.at[0].set(ignore_index).at[5].set(ignore_index)
    loss1 = jax.block_until_ready(label_smoothed_ce_loss(
        lprobs, target, smoothing=smoothing, ignore_index=ignore_index))
    _check("case1", loss1, _reference(lprobs, target, smoothing, ignore_index))

    # Case 2: odd shapes (ragged row + vocab tiles, multi-step grid on both
    # axes, no wrapper padding), no ignore_index, forced small tiles.
    n2, vocab2 = 37, 200
    logits2 = jax.random.normal(k3, (n2, vocab2), dtype=jnp.float32)
    lprobs2 = jax.nn.log_softmax(logits2, axis=-1)
    target2 = jax.random.randint(k4, (n2,), 0, vocab2, dtype=jnp.int32)
    loss2 = jax.block_until_ready(label_smoothed_ce_loss(
        lprobs2, target2, smoothing=smoothing, ignore_index=None, tm=8, tv=128))
    _check("case2", loss2, _reference(lprobs2, target2, smoothing, None))

    # Case 3: bf16 lprobs streamed in native dtype, ragged shapes, ignore_index.
    n3, vocab3 = 50, 300
    ignore3 = 2
    logits3 = jax.random.normal(k5, (n3, vocab3), dtype=jnp.float32)
    lprobs3 = jax.nn.log_softmax(logits3, axis=-1).astype(jnp.bfloat16)
    target3 = jax.random.randint(k6, (n3,), 0, vocab3, dtype=jnp.int32)
    target3 = target3.at[3].set(ignore3).at[17].set(ignore3)
    loss3 = jax.block_until_ready(label_smoothed_ce_loss(
        lprobs3, target3, smoothing=smoothing, ignore_index=ignore3))
    _check("case3", loss3, _reference(lprobs3, target3, smoothing, ignore3))

    print("KERNEL_OK")
</pallas_src>

<mosaic_0001>
module attributes {stable_mosaic.version = 11 : i64} {
  func.func @_ls_ce_kernel(%arg0: i32, %arg1: i32, %arg2: memref<16x1xi32, #tpu.memory_space<vmem>>, %arg3: memref<16x128xf32, #tpu.memory_space<vmem>>, %arg4: memref<1x2x128xf32, #tpu.memory_space<vmem>>) attributes {dimension_semantics = [#tpu.dimension_semantics<parallel>, #tpu.dimension_semantics<arbitrary>], iteration_bounds = array<i64: 1, 1>, scalar_prefetch = 0 : i64, scratch_operands = 0 : i64, tpu.core_type = #tpu.core_type<tc>, window_params = [{transform_indices = @transform_0, window_bounds = array<i64: 16, 1>}, {transform_indices = @transform_1, window_bounds = array<i64: 16, 128>}, {transform_indices = @transform_2, window_bounds = array<i64: 1, 2, 128>}]} {
    %c0_i32 = arith.constant 0 : i32
    %0 = arith.cmpi eq, %arg1, %c0_i32 : i32
    %1 = arith.extui %0 : i1 to i32
    %c0_i32_0 = arith.constant 0 : i32
    %2 = arith.cmpi ne, %1, %c0_i32_0 : i32
    scf.if %2 {
      %cst_14 = arith.constant 0.000000e+00 : f32
      %30 = vector.broadcast %cst_14 : f32 to vector<1x2x128xf32>
      %c0_15 = arith.constant 0 : index
      %c0_16 = arith.constant 0 : index
      %c0_17 = arith.constant 0 : index
      %31 = vector.load %arg4[%c0_15, %c0_16, %c0_17] : memref<1x2x128xf32, #tpu.memory_space<vmem>>, vector<1x2x128xf32>
      tpu.vector_store %arg4[%c0_15, %c0_16, %c0_17], %30 {strides = array<i32>} : memref<1x2x128xf32, #tpu.memory_space<vmem>>, vector<1x2x128xf32>,
    } else {
    }
    %c0 = arith.constant 0 : index
    %c0_1 = arith.constant 0 : index
    %3 = vector.load %arg3[%c0, %c0_1] : memref<16x128xf32, #tpu.memory_space<vmem>>, vector<16x128xf32>
    %c0_2 = arith.constant 0 : index
    %c0_3 = arith.constant 0 : index
    %4 = vector.load %arg2[%c0_2, %c0_3] : memref<16x1xi32, #tpu.memory_space<vmem>>, vector<16x1xi32>
    %c1_i32 = arith.constant 1 : i32
    %5 = vector.broadcast %c1_i32 : i32 to vector<16x1xi32>
    %6 = arith.cmpi ne, %4, %5 : vector<16x1xi32>
    %c-1_i32 = arith.constant -1 : i32
    %7 = vector.broadcast %c-1_i32 : i32 to vector<16x1xi32>
    %8 = arith.select %6, %4, %7 : vector<16x1xi1>, vector<16x1xi32>
    %cst = arith.constant 0.000000e+00 : f32
    %9 = vector.broadcast %cst : f32 to vector<16x128xf32>
    %10 = vector.shape_cast %6 : vector<16x1xi1> to vector<16x1xi1>
    %11 = vector.broadcast %10 : vector<16x1xi1> to vector<16x128xi1>
    %12 = arith.select %11, %3, %9 : vector<16x128xi1>, vector<16x128xf32>
    %13 = tpu.iota {dimensions = array<i32: 1>} : vector<1x128xi32>
    %c128_i32 = arith.constant 128 : i32
    %14 = arith.muli %arg1, %c128_i32 : i32
    %15 = vector.broadcast %14 : i32 to vector<16x1xi32>
    %16 = arith.subi %8, %15 : vector<16x1xi32>
    %17 = vector.broadcast %13 : vector<1x128xi32> to vector<16x128xi32>
    %18 = vector.broadcast %16 : vector<16x1xi32> to vector<16x128xi32>
    %19 = arith.cmpi eq, %17, %18 : vector<16x128xi32>
    %cst_4 = arith.constant 0.000000e+00 : f32
    %20 = vector.broadcast %cst_4 : f32 to vector<16x128xf32>
    %21 = arith.select %19, %12, %20 : vector<16x128xi1>, vector<16x128xf32>
    %cst_5 = arith.constant 1.000000e+00 : f32
    %22 = vector.broadcast %cst_5 : f32 to vector<1x16xf32>
    %cst_6 = arith.constant dense<0.000000e+00> : vector<1x128xf32>
    %23 = tpu.matmul %22, %21, %cst_6 {dimension_numbers = #tpu.dot_dimension_numbers<[1], [0], [0], [1], [0, 0, 1, 1], [], []>, precision = #tpu.contract_precision<fp32>} : vector<1x16xf32>, vector<16x128xf32>, vector<1x128xf32> -> vector<1x128xf32>
    %cst_7 = arith.constant dense<0.000000e+00> : vector<1x128xf32>
    %24 = tpu.matmul %22, %12, %cst_7 {dimension_numbers = #tpu.dot_dimension_numbers<[1], [0], [0], [1], [0, 0, 1, 1], [], []>, precision = #tpu.contract_precision<fp32>} : vector<1x16xf32>, vector<16x128xf32>, vector<1x128xf32> -> vector<1x128xf32>
    %c0_8 = arith.constant 0 : index
    %c0_9 = arith.constant 0 : index
    %c0_10 = arith.constant 0 : index
    %25 = vector.load %arg4[%c0_8, %c0_9, %c0_10] : memref<1x2x128xf32, #tpu.memory_space<vmem>>, vector<1x2x128xf32>
    %26 = tpu.concatenate %23, %24 in 0 : vector<1x128xf32>, vector<1x128xf32> -> vector<2x128xf32>
    %27 = vector.shape_cast %26 : vector<2x128xf32> to vector<1x2x128xf32>
    %28 = arith.addf %25, %27 : vector<1x2x128xf32>
    %c0_11 = arith.constant 0 : index
    %c0_12 = arith.constant 0 : index
    %c0_13 = arith.constant 0 : index
    %29 = vector.load %arg4[%c0_11, %c0_12, %c0_13] : memref<1x2x128xf32, #tpu.memory_space<vmem>>, vector<1x2x128xf32>
    tpu.vector_store %arg4[%c0_11, %c0_12, %c0_13], %28 {strides = array<i32>} : memref<1x2x128xf32, #tpu.memory_space<vmem>>, vector<1x2x128xf32>,
    return
  }
  func.func @transform_0(%arg0: i32, %arg1: i32) -> (i32, i32) {
    %c0_i32 = arith.constant 0 : i32
    %c0_i32_0 = arith.constant 0 : i32
    return %arg0, %c0_i32 : i32, i32
  }
  func.func @transform_1(%arg0: i32, %arg1: i32) -> (i32, i32) {
    %c0_i32 = arith.constant 0 : i32
    return %arg0, %arg1 : i32, i32
  }
  func.func @transform_2(%arg0: i32, %arg1: i32) -> (i32, i32, i32) {
    %c0_i32 = arith.constant 0 : i32
    %c0_i32_0 = arith.constant 0 : i32
    %c0_i32_1 = arith.constant 0 : i32
    return %arg0, %c0_i32, %c0_i32_0 : i32, i32, i32
  }
}

</mosaic_0001>

<bundles_post_ra>
// kernel: tpu_custom_call.1
= control target key start
LH: loop header
LB: loop body
LE: loop exit
PB: predicated region body
PF: predicated region fallthrough
CT: control target
= control target key end

     0   :  { %s1311_s0 = inlined_call_operand.vmem [shape: s32[16,1], index: 0, kind: input, shape index: {}]   ;;  %s1312_s1 = inlined_call_operand.vmem [shape: f32[16,128], index: 1, kind: input, shape index: {}]   ;;  %s1313_s2 = inlined_call_operand.hbm [shape: f32[1,2,128], index: 2, kind: output, shape index: {}]  }
   0x1   :  { %v19_v0 = vld [vmem:[%s1311_s0] sm:$0xff]  ;;  %v20_v1 = vld [vmem:[%s1311_s0 + $0x8] sm:$0xff] }
   0x2   :  { %7 = vsyncpa [#allocation3], 0  ;;  %v1211_v2 = vmov 0   ;;  %vm21_vm0 = vcmp.ne.s32.totalorder %v19_v0, 1  ;;  %vm22_vm1 = vcmp.ne.s32.totalorder %v20_v1, 1  ;;  %v1212_v7 = vmov 0.0|0.0  }
   0x3   :  { %1186 = vset.pattern.permute.xlu1 %v1211_v2  ;;  %1185 = vset.pattern.permute.xlu0 %v1211_v2  ;;  %v25_v3 = vsel %vm21_vm0, 1, %v1211_v2  ;;  %v23_v4 = vsel %vm21_vm0, %v19_v0, 4294967295  ;;  %v26_v5 = vsel %vm22_vm1, 1, %v1211_v2  ;;  %v24_v6 = vsel %vm22_vm1, %v20_v1, 4294967295  ;;  %v17_v13 = vld [vmem:[%s1312_s1] sm:$0xff]  ;;  %v18_v20 = vld [vmem:[%s1312_s1 + $0x8] sm:$0xff] }
   0x4   :  { %28 = vperm.xlu0 %1185, %v25_v3   ;;  %44 = vperm.xlu1 %1186, %v23_v4   ;;  %vm1213_vm2 = vmmov 0   ;;  %v1214_v8 = vmov 0.0   ;;  %vm53_vm3 = vcmask 130048   ;;  %v37_v9 = vlaneseq  ;;  %s1216_s1 = smov [#allocation2]  }
   0x5   :  { %1141 = vmatprep.subr.bf16.mxu1 %v1212_v7  ;;  %1123 = vmatprep.subr.bf16.mxu0 %v1212_v7  ;;  %16 = vst [vmem:[#allocation2] sm:$0x3] %v1214_v8  ;;  %v55_v10 = vsel %vm53_vm3, 1.0, %v1211_v2  ;;  %v1215_v52 = vmov 1.0   ;;  %vm979_vm8 = vcmask 1040384   ;;  %s989_s16 = sshll.u32 %s1216_s1, 4  ;;  %s990_s16 = int_to_ptr.vmem [resolvable:$true] %s989_s16 }
   0x6   :  { %1085 = vmatprep.mubr.msk.f32.mxu1 %vm1213_vm2, %v1214_v8  ;;  %1043 = vmatprep.mubr.msk.f32.mxu0 %vm1213_vm2, %v1214_v8  ;;  %v38_v11 = vand.u32 127, %v37_v9  ;;  %v1246_v12 = vsub.f32 %v55_v10, %v55_v10  ;;  %s1187_s17 = scalar_lea.vmem %s990_s16, 32  ;;  %p1192_p1 = scmp.lt.s32.totalorder %s990_s16, %s990_s16 }
   0x7   :  { %p1188_p0 = scmp.ne.s32.totalorder %s990_s16, %s1187_s17  ;;  %p1193_p2 = scmp.lt.s32.totalorder %s1187_s17, %s1187_s17 }
   0x8   :  { %31 = vperm.xlu0 %1185, %v26_v5   ;;  %47 = vperm.xlu1 %1186, %v24_v6   ;;  %v1252_v17 = vand.u32 4294901760, %v1246_v12 }
   0x9   :  { %p1194_p3 = por %p1193_p2, %p1192_p1 }
   0xa   :  { %v127_v27 = vsub.f32 %v1246_v12, %v1252_v17 }
   0xb   :  { %p1195_p4 = pnand %p1194_p3, %p1188_p0 }
   0xc   :  { %v128_v37 = vand.u32 4294901760, %v127_v27  ;;  %v975_v58 = vld [vmem:[#allocation2] sm:$0x3] }
  0x83   :  { %v29_v14 = vpop.permute.xlu0 %28  ;;  %v45_v15 = vpop.permute.xlu1 %44 }
  0x84   :  { %vm33_vm4 = vcmp.eq.s32.totalorder %v29_v14, 1  ;;  %vm49_vm5 = vcmp.eq.s32.totalorder %v38_v11, %v45_v15 }
  0x85   :  { %v35_v16 = vsel %vm33_vm4, %v17_v13, 0.0 }
  0x86   :  { %v517_v18 = vand.u32 4294901760, %v35_v16  ;;  %v51_v19 = vsel %vm49_vm5, %v35_v16, 0.0 }
  0x87   :  { %v58_v21 = vand.u32 4294901760, %v51_v19  ;;  %v32_v22 = vpop.permute.xlu0 %31  ;;  %v48_v23 = vpop.permute.xlu1 %47 }
  0x88   :  { %v595_v24 = vsub.f32 %v35_v16, %v517_v18  ;;  %vm34_vm6 = vcmp.eq.s32.totalorder %v32_v22, 1  ;;  %vm50_vm7 = vcmp.eq.s32.totalorder %v38_v11, %v48_v23 }
  0x89   :  { %v136_v25 = vsub.f32 %v51_v19, %v58_v21  ;;  %v36_v26 = vsel %vm34_vm6, %v18_v20, 0.0 }
  0x8a   :  { %v596_v28 = vand.u32 4294901760, %v595_v24  ;;  %v520_v29 = vand.u32 4294901760, %v36_v26  ;;  %v52_v30 = vsel %vm50_vm7, %v36_v26, 0.0 }
  0x8b   :  { %v137_v31 = vand.u32 4294901760, %v136_v25  ;;  %v61_v32 = vand.u32 4294901760, %v52_v30 }
  0x8c   :  { %v602_v33 = vsub.f32 %v36_v26, %v520_v29  ;;  %v1142_v34 = vpack.c.bf16 %v520_v29, %v517_v18  ;;  %v597_v38 = vsub.f32 %v595_v24, %v596_v28 }
  0x8d   :  { %v143_v35 = vsub.f32 %v52_v30, %v61_v32  ;;  %v1124_v36 = vpack.c.bf16 %v61_v32, %v58_v21  ;;  %v138_v40 = vsub.f32 %v136_v25, %v137_v31 }
  0x8e   :  { %v603_v39 = vand.u32 4294901760, %v602_v33  ;;  %1143 = vmatpush3.bf16.msra.mxu1 %v1142_v34  ;;  %v598_v44 = vand.u32 4294901760, %v597_v38  ;;  %v1148_v50 = vpack.c.bf16 %v602_v33, %v595_v24 }
  0x8f   :  { %v144_v41 = vand.u32 4294901760, %v143_v35  ;;  %1125 = vmatpush3.bf16.msra.mxu0 %v1124_v36  ;;  %1144 = vmatprep.subr.bf16.mxu1 %v1212_v7  ;;  %v139_v46 = vand.u32 4294901760, %v138_v40  ;;  %v1130_v51 = vpack.c.bf16 %v143_v35, %v136_v25 }
  0x90   :  { %v604_v42 = vsub.f32 %v602_v33, %v603_v39  ;;  %1126 = vmatprep.subr.bf16.mxu0 %v1212_v7  ;;  %v1154_v53 = vpack.c.bf16 %v603_v39, %v596_v28 }
  0x91   :  { %v145_v43 = vsub.f32 %v143_v35, %v144_v41  ;;  %1086 = vmatmul.mubr.f32.vlgmr.msra.gmra.mrb[0].mxu1 %v128_v37  ;;  %v1136_v54 = vpack.c.bf16 %v144_v41, %v137_v31 }
  0x92   :  { %v605_v45 = vand.u32 4294901760, %v604_v42  ;;  %1044 = vmatmul.mubr.f32.vlgmr.msra.gmra.mrb[0].mxu0 %v128_v37  ;;  %1092 = vmatprep.mubr.msk.f32.mxu1 %vm1213_vm2, %v1214_v8 }
  0x93   :  { %v146_v47 = vand.u32 4294901760, %v145_v43  ;;  %1050 = vmatprep.mubr.msk.f32.mxu0 %vm1213_vm2, %v1214_v8 }
  0x94   :  { %v1145_v48 = vpack.c.bf16 %v605_v45, %v598_v44 }
  0x95   :  { %v1127_v49 = vpack.c.bf16 %v146_v47, %v139_v46 }
  0x96   :  { %1146 = vmatpush3.bf16.msra.mxu1 %v1145_v48 }
  0x97   :  { %1128 = vmatpush3.bf16.msra.mxu0 %v1127_v49  ;;  %1147 = vmatprep.subr.bf16.mxu1 %v1212_v7 }
  0x98   :  { %1129 = vmatprep.subr.bf16.mxu0 %v1212_v7 }
  0x99   :  { %1093 = vmatmul.mubr.msk.f32.vlgmr.msra.gmra.mrb[0].mxu1 %vm53_vm3, %v1215_v52 }
  0x9a   :  { %1051 = vmatmul.mubr.msk.f32.vlgmr.msra.gmra.mrb[0].mxu0 %vm53_vm3, %v1215_v52  ;;  %1149 = vmatpush3.bf16.msra.mxu1 %v1148_v50 }
  0x9b   :  { %1131 = vmatpush3.bf16.msra.mxu0 %v1130_v51  ;;  %1099 = vmatprep.mubr.msk.f32.mxu1 %vm1213_vm2, %v1214_v8 }
  0x9c   :  { %1150 = vmatprep.subr.bf16.mxu1 %v1212_v7  ;;  %1057 = vmatprep.mubr.msk.f32.mxu0 %vm1213_vm2, %v1214_v8 }
  0x9d   :  { %1132 = vmatprep.subr.bf16.mxu0 %v1212_v7 }
  0xa1   :  { %1100 = vmatmul.mubr.f32.vlgmr.msra.gmra.mrb[0].mxu1 %v1246_v12 }
  0xa2   :  { %1152 = vmatpush3.bf16.msra.mxu1 %v1142_v34  ;;  %1058 = vmatmul.mubr.f32.vlgmr.msra.gmra.mrb[0].mxu0 %v1246_v12 }
  0xa3   :  { %1134 = vmatpush3.bf16.msra.mxu0 %v1124_v36  ;;  %1106 = vmatprep.mubr.msk.f32.mxu1 %vm1213_vm2, %v1214_v8 }
  0xa4   :  { %1153 = vmatprep.subr.bf16.mxu1 %v1212_v7  ;;  %1064 = vmatprep.mubr.msk.f32.mxu0 %vm1213_vm2, %v1214_v8 }
  0xa5   :  { %1135 = vmatprep.subr.bf16.mxu0 %v1212_v7 }
  0xa9   :  { %1107 = vmatmul.mubr.f32.vlgmr.msra.gmra.mrb[0].mxu1 %v1252_v17 }
  0xaa   :  { %1155 = vmatpush3.bf16.msra.mxu1 %v1154_v53  ;;  %1065 = vmatmul.mubr.f32.vlgmr.msra.gmra.mrb[0].mxu0 %v1252_v17 }
  0xab   :  { %1137 = vmatpush3.bf16.msra.mxu0 %v1136_v54  ;;  %1113 = vmatprep.mubr.msk.f32.mxu1 %vm1213_vm2, %v1214_v8 }
  0xac   :  { %1156 = vmatprep.subr.bf16.mxu1 %v1212_v7  ;;  %1071 = vmatprep.mubr.msk.f32.mxu0 %vm1213_vm2, %v1214_v8 }
  0xad   :  { %1138 = vmatprep.subr.bf16.mxu0 %v1212_v7 }
  0xb1   :  { %1114 = vmatmul.mubr.msk.f32.vlgmr.msra.gmra.mrb[0].mxu1 %vm53_vm3, %v1215_v52 }
  0xb2   :  { %1158 = vmatpush3.bf16.msra.mxu1 %v1142_v34  ;;  %1072 = vmatmul.mubr.msk.f32.vlgmr.msra.gmra.mrb[0].mxu0 %vm53_vm3, %v1215_v52 }
  0xb3   :  { %1140 = vmatpush3.bf16.msra.mxu0 %v1124_v36  ;;  %1120 = vmatprep.mubr.msk.f32.mxu1 %vm1213_vm2, %v1214_v8 }
  0xb4   :  { %1078 = vmatprep.mubr.msk.f32.mxu0 %vm1213_vm2, %v1214_v8 }
  0xb9   :  { %1121 = vmatmul.mubr.msk.f32.vlgmr.msra.gmra.mrb[0].mxu1 %vm53_vm3, %v1215_v52 }
  0xba   :  { %1079 = vmatmul.mubr.msk.f32.vlgmr.msra.gmra.mrb[0].mxu0 %vm53_vm3, %v1215_v52 }
 0x18c   :  { %v971_v55 = vpop.f32.mrb[0].mxu1 }
 0x18d   :  { %v977_v56 = vrot.slane %v971_v55, 7  ;;  %v512_v57 = vpop.f32.mrb[0].mxu0  ;;  %v1122_v59 = vpop.f32.mrb[1].mxu1 }
 0x18e   :  { %v1080_v60 = vpop.f32.mrb[1].mxu0 }
 0x18f   :  { %v980_v61 = vsel %vm979_vm8, %v512_v57, %v977_v56 }
 0x190   :  { %v981_v62 = vadd.f32 %v980_v61, %v975_v58 }
 0x192   :  { %982 = vst [vmem:[#allocation2] sm:$0x3] %v981_v62 }
 0x193   :  { %1198 = shalt.err (!%p1195_p4)
}
 0x194   :  { %s1199_s20 = scalar_lea.hbm %s1313_s2, 32 }
 0x195   :  { %p1200_p5 = scmp.ne.s32.totalorder %s1313_s2, %s1199_s20  ;;  %p1203_p6 = scmp.lt.u32.totalorder %s1199_s20, %s1313_s2 }
 0x197   :  { %p1205_p7 = pnand %p1203_p6, %p1200_p5 }
 0x199   :  { %1208 = shalt.err (!%p1205_p7)
}
 0x19a   :  { %992 = dma.vmem_to_hbm [thread:$0]  %s990_s16, 32, %s1313_s2, [#allocation3]  }
 0x19b   :  { %1209 = dma.done.wait [#allocation3], 32  }
 0x19c   :  { %1210 = vsyncadd [#allocation3], 4294967264 }
 0x19d   :  { %996 = vsyncpa [#allocation3], 1 }

</bundles_post_ra>
